<compile_context>
chip_gen: v7x
topology: tpu7x:2x2x1
jax: 0.10.0
libtpu: 0.0.40
codegen_flags: <defaults>
</compile_context>

<pallas_src>
import functools

import jax
import jax.numpy as jnp
from jax.experimental import pallas as pl
from jax.experimental.pallas import tpu as pltpu


def _embedding_gather_kernel(ids_ref, table_ref, o_ref, buf_ref, sem, *, tm):
    """Gather `tm` embedding rows for one tile of tokens.

    ids_ref   : (M_pad,) int32 in SMEM (scalar prefetch) -- flattened token ids
    table_ref : (V, D) embedding table, left in HBM (pl.ANY)
    o_ref     : (tm, D) output tile in VMEM
    buf_ref   : (tm, D) VMEM gather staging buffer
    sem       : single DMA completion semaphore shared by all row copies
    """
    base = pl.program_id(0) * tm

    # Issue all row DMAs for this tile; they overlap with each other.
    def _start(j, carry):
        row = ids_ref[base + j]
        pltpu.make_async_copy(
            table_ref.at[pl.ds(row, 1)],   # (1, D) row of the HBM table
            buf_ref.at[pl.ds(j, 1)],       # (1, D) slot in VMEM
            sem,
        ).start()
        return carry

    jax.lax.fori_loop(0, tm, _start, 0)

    # All copies are the same size and share one semaphore, so `tm` waits with
    # a same-shaped descriptor drain every outstanding copy.
    def _wait(j, carry):
        pltpu.make_async_copy(
            table_ref.at[pl.ds(0, 1)],
            buf_ref.at[pl.ds(0, 1)],
            sem,
        ).wait()
        return carry

    jax.lax.fori_loop(0, tm, _wait, 0)

    # One lane-dense (tm, D) store; Pallas pipelines the HBM writeback.
    o_ref[...] = buf_ref[...]


@functools.partial(jax.jit, static_argnames=("tm",))
def lookup_encoder_forward(batch, embedding_table, *, tm=128):
    """LookupEncoder.forward: embedding lookup.

    batch:            integer index array of any shape, e.g. (B, T)
    embedding_table:  (vocab_size, embedding_dim)
    returns           batch.shape + (embedding_dim,)
    """
    V, D = embedding_table.shape
    ids = batch.reshape(-1).astype(jnp.int32)
    M = ids.shape[0]

    # Row tile: big enough to amortize per-grid-step overhead, multiple of 8
    # (output block sublane constraint), clamped for tiny inputs so we don't
    # gather hundreds of dummy rows.
    m_r8 = ((M + 7) // 8) * 8
    tm_eff = max(8, min(((tm + 7) // 8) * 8, m_r8))
    n_tiles = (M + tm_eff - 1) // tm_eff
    M_pad = n_tiles * tm_eff

    if M_pad != M:
        # Only the tiny int32 index vector is padded; padded slots gather row 0
        # and the corresponding output rows are discarded below.
        ids = jnp.pad(ids, (0, M_pad - M))

    itemsize = jnp.dtype(embedding_table.dtype).itemsize
    cost = pl.CostEstimate(
        flops=0,
        transcendentals=0,
        bytes_accessed=M_pad * 4 + 2 * M_pad * D * itemsize,
    )

    out2d = pl.pallas_call(
        functools.partial(_embedding_gather_kernel, tm=tm_eff),
        out_shape=jax.ShapeDtypeStruct((M_pad, D), embedding_table.dtype),
        grid_spec=pltpu.PrefetchScalarGridSpec(
            num_scalar_prefetch=1,          # flattened ids -> SMEM
            grid=(n_tiles,),
            in_specs=[
                # Embedding table stays in HBM; rows are DMA-gathered manually.
                pl.BlockSpec(memory_space=pl.ANY),
            ],
            out_specs=pl.BlockSpec((tm_eff, D), lambda i, ids: (i, 0)),
            scratch_shapes=[
                pltpu.VMEM((tm_eff, D), embedding_table.dtype),
                pltpu.SemaphoreType.DMA(()),
            ],
        ),
        compiler_params=pltpu.CompilerParams(
            dimension_semantics=("parallel",),  # shard token tiles across TCs (v7x)
        ),
        cost_estimate=cost,
    )(ids, embedding_table)

    out2d = out2d[:M]
    return out2d.reshape(batch.shape + (D,))


if __name__ == "__main__":
    # Small deterministic shapes: vocab=50, embedding_dim=32, batch=2, seq=8.
    vocab_size, embedding_dim = 50, 32
    B, T = 2, 8

    key = jax.random.PRNGKey(0)
    k_tbl, k_ids = jax.random.split(key)

    # Deterministic synthetic table (stands in for pretrain_embedding / learned
    # weights -- the pretrained-weight copy in __init__ is init-time state, not
    # part of the forward pass).
    table = jax.random.normal(k_tbl, (vocab_size, embedding_dim), dtype=jnp.float32) * 0.1
    batch = jax.random.randint(k_ids, (B, T), 0, vocab_size, dtype=jnp.int32)

    out = lookup_encoder_forward(batch, table)
    out = jax.block_until_ready(out)

    # Reference: exactly what nn.Embedding forward does.
    ref = jnp.take(table, batch, axis=0)
    assert out.shape == (B, T, embedding_dim), out.shape
    assert jnp.allclose(out, ref, atol=1e-6, rtol=1e-6), "mismatch vs reference"

    print("KERNEL_OK")
</pallas_src>

<mosaic_0001>
module attributes {stable_mosaic.version = 11 : i64} {
  func.func @_embedding_gather_kernel(%arg0: i32, %arg1: memref<16xi32, #tpu.memory_space<smem>>, %arg2: memref<50x32xf32, #tpu.memory_space<any>>, %arg3: memref<16x32xf32, #tpu.memory_space<vmem>>, %arg4: memref<16x32xf32, #tpu.memory_space<vmem>>, %arg5: memref<!tpu.dma_semaphore, #tpu.memory_space<semaphore_mem>>) attributes {dimension_semantics = [#tpu.dimension_semantics<parallel>], iteration_bounds = array<i64: 1>, scalar_prefetch = 1 : i64, scratch_operands = 2 : i64, tpu.core_type = #tpu.core_type<tc>, window_params = [{}, {transform_indices = @transform_1, window_bounds = array<i64: 16, 32>}]} {
    %c16_i32 = arith.constant 16 : i32
    %0 = arith.muli %arg0, %c16_i32 : i32
    %c0_i32 = arith.constant 0 : i32
    %c16_i32_0 = arith.constant 16 : i32
    %1 = arith.addi %c0_i32, %c16_i32_0 : i32
    %c1_i32 = arith.constant 1 : i32
    scf.for %arg6 = %c0_i32 to %1 step %c1_i32  : i32 {
      %5 = arith.addi %0, %arg6 : i32
      %6 = arith.index_cast %5 : i32 to index
      %7 = memref.load %arg1[%6] : memref<16xi32, #tpu.memory_space<smem>>
      %c0_i32_8 = arith.constant 0 : i32
      %8 = tpu.memref_slice %arg2[%7, %c0_i32_8] : memref<50x32xf32, #tpu.memory_space<any>> -> memref<1x32xf32, #tpu.memory_space<any>>
      %c0_i32_9 = arith.constant 0 : i32
      %9 = tpu.memref_slice %arg4[%arg6, %c0_i32_9] : memref<16x32xf32, #tpu.memory_space<vmem>> -> memref<1x32xf32, #tpu.memory_space<vmem>>
      tpu.enqueue_dma source(%8 : memref<1x32xf32, #tpu.memory_space<any>>) target(%9 : memref<1x32xf32, #tpu.memory_space<vmem>>) target_semaphore(%arg5 : memref<!tpu.dma_semaphore, #tpu.memory_space<semaphore_mem>>)
    }
    %c16_i32_1 = arith.constant 16 : i32
    %c0_i32_2 = arith.constant 0 : i32
    %c16_i32_3 = arith.constant 16 : i32
    %2 = arith.addi %c0_i32_2, %c16_i32_3 : i32
    %c1_i32_4 = arith.constant 1 : i32
    scf.for %arg6 = %c0_i32_2 to %2 step %c1_i32_4  : i32 {
      %c0_i32_8 = arith.constant 0 : i32
      %c0_i32_9 = arith.constant 0 : i32
      %5 = tpu.memref_slice %arg2[%c0_i32_8, %c0_i32_9] : memref<50x32xf32, #tpu.memory_space<any>> -> memref<1x32xf32, #tpu.memory_space<any>>
      %c0_i32_10 = arith.constant 0 : i32
      %c0_i32_11 = arith.constant 0 : i32
      %6 = tpu.memref_slice %arg4[%c0_i32_10, %c0_i32_11] : memref<16x32xf32, #tpu.memory_space<vmem>> -> memref<1x32xf32, #tpu.memory_space<vmem>>
      tpu.wait_dma2 semaphore(%arg5 : memref<!tpu.dma_semaphore, #tpu.memory_space<semaphore_mem>>) src(%5 : memref<1x32xf32, #tpu.memory_space<any>>) dst(%6 : memref<1x32xf32, #tpu.memory_space<vmem>>)
    }
    %c0 = arith.constant 0 : index
    %c0_5 = arith.constant 0 : index
    %3 = vector.load %arg4[%c0, %c0_5] : memref<16x32xf32, #tpu.memory_space<vmem>>, vector<16x32xf32>
    %c0_6 = arith.constant 0 : index
    %c0_7 = arith.constant 0 : index
    %4 = vector.load %arg3[%c0_6, %c0_7] : memref<16x32xf32, #tpu.memory_space<vmem>>, vector<16x32xf32>
    tpu.vector_store %arg3[%c0_6, %c0_7], %3 {strides = array<i32>} : memref<16x32xf32, #tpu.memory_space<vmem>>, vector<16x32xf32>,
    return
  }
  func.func @transform_1(%arg0: i32, %arg1: memref<16xi32, #tpu.memory_space<smem>>) -> (i32, i32) {
    %c0_i32 = arith.constant 0 : i32
    %c0_i32_0 = arith.constant 0 : i32
    return %arg0, %c0_i32 : i32, i32
  }
}

</mosaic_0001>

<bundles_post_ra>
// kernel: lookup_encoder_forward.1
= control target key start
LH: loop header
LB: loop body
LE: loop exit
PB: predicated region body
PF: predicated region fallthrough
CT: control target
= control target key end

     0   :  { %s241_s0 = inlined_call_operand.vmem [shape: s32[16], index: 0, kind: input, shape index: {}]   ;;  %s242_s1 = inlined_call_operand.vmem [shape: f32[50,32], index: 1, kind: input, shape index: {}]   ;;  %s243_s2 = inlined_call_operand.hbm [shape: f32[16,32], index: 2, kind: output, shape index: {}]  }
   0x1   :  { %s7_s11 = sshll.u32 %s241_s0, 4  ;;  %s8_s11 = int_to_ptr.vmem [resolvable:$true] %s7_s11 }
   0x2   :  { %s148_s12 = scalar_lea.vmem %s8_s11, 16  ;;  %p153_p1 = scmp.lt.s32.totalorder %s8_s11, %s8_s11 }
   0x3   :  { %p149_p0 = scmp.ne.s32.totalorder %s8_s11, %s148_s12  ;;  %p154_p2 = scmp.lt.s32.totalorder %s148_s12, %s148_s12 }
   0x5   :  { %p155_p3 = por %p154_p2, %p153_p1 }
   0x7   :  { %p156_p4 = pnand %p155_p3, %p149_p0 }
   0x9   :  { %159 = shalt.err (!%p156_p4)  }
   0xa   :  { %s204_s13 = smov [#allocation5]  }
   0xb   :  { %10 = dma.vmem_to_smem %s8_s11, 16, %s204_s13, [#allocation4] }
   0xc   :  { %190 = dma.done.wait [#allocation4], 16 }
   0xd   :  { %191 = vsyncadd [#allocation4], 4294967280 }
   0xe   :  { %12 = sfence }
   0xf   :  { %13 = vsyncpa [#allocation7], 0  ;;  %s196_s14 = smov 0  }
  0x10 LB: > { %s22_s15 = sld [smem:[#allocation5 + %s198_s14]]  ;;  %s24_s18 = scalar_lea.vmem [#allocation2], %s198_s14  ;;  %s198_s14 = sphi %s196_s14, %s20_s14  }
  0x16   : > { %s23_s17 = scalar_lea.vmem %s242_s1, %s22_s15 }
  0x17   : > { %v42_v0 = vld [vmem:[%s23_s17] sm:$0x1] }
  0x18   : > { %43 = vst [vmem:[%s24_s18] sm:$0x1] %v42_v0 }
  0x19   : > { %68 = vsyncadd [#allocation3], 16  ;;  %s20_s14 = sadd.s32 1, %s198_s14  }
  0x1a   : > { %p17_p5 = scmp.ge.s32.totalorder %s20_s14, 16  }
  0x1b   :  { %s200_s19 = smov (%p17_p5), 0  }
  0x1c   :  { %19 = sbr.rel (!%p17_p5) target bundleno = 16 (0x10), region = 76 }
  0x23 LB: > { %192 = dma.done.wait [#allocation3], 16  ;;  %s202_s19 = sphi %s200_s19, %s74_s19  }
  0x24   : > { %193 = vsyncadd [#allocation3], 4294967280  ;;  %s74_s19 = sadd.s32 1, %s202_s19  }
  0x25   : > { %p71_p6 = scmp.ge.s32.totalorder %s74_s19, 16  }
  0x26   :  { %v78_v1 = vld [vmem:[#allocation2] sm:$0xff] (%p71_p6)  ;;  %vm80_vm0 = vcmask (%p71_p6), 261120   ;;  %v79_v2 = vld [vmem:[#allocation2 + $0x8] sm:$0xff] (%p71_p6)  ;;  %s205_s20 = smov (%p71_p6), [#allocation6]  }
  0x27   :  { %73 = sbr.rel (!%p71_p6) target bundleno = 35 (0x23), region = 87  ;;  %81 = vst.msk [vmem:[#allocation6] sm:$0xff] (%p71_p6), %vm80_vm0, %v78_v1  ;;  %82 = vst.msk [vmem:[#allocation6 + $0x8] sm:$0xff] (%p71_p6), %vm80_vm0, %v79_v2  ;;  %s88_s21 = sshll.u32 (%p71_p6), %s205_s20, 4  ;;  %s89_s21 = int_to_ptr.vmem [resolvable:$true] %s88_s21 }
  0x28   :  { %s160_s22 = scalar_lea.vmem (%p71_p6), %s89_s21, 256  ;;  %p165_p8 = scmp.lt.s32.totalorder (%p71_p6), %s89_s21, %s89_s21 }
  0x29   :  { %p161_p7 = scmp.ne.s32.totalorder (%p71_p6), %s89_s21, %s160_s22  ;;  %p166_p9 = scmp.lt.s32.totalorder (%p71_p6), %s160_s22, %s160_s22 }
  0x2b   :  { %p167_p10 = por (%p71_p6), %p166_p9, %p165_p8 }
  0x2d   :  { %p168_p11 = pnand (%p71_p6), %p167_p10, %p161_p7 }
  0x2f   :  { %171 = shalt.err (!%p168_p11)
}
  0x30   :  { %s172_s24 = scalar_lea.hbm %s243_s2, 256 }
  0x31   :  { %p173_p12 = scmp.ne.s32.totalorder %s243_s2, %s172_s24  ;;  %p176_p13 = scmp.lt.u32.totalorder %s172_s24, %s243_s2 }
  0x33   :  { %p178_p0 = pnand %p176_p13, %p173_p12 }
  0x35   :  { %181 = shalt.err (!%p178_p0)
}
  0x36   :  { %s206_s29 = smov 128   ;;  %s207_s30 = smov 8  }
  0x37   :  { %94 = dma.vmem_to_hbm [thread:$0]  %s89_s21, 256, %s243_s2, [#allocation7], %s206_s29, %s206_s29, %s207_s30  }
  0x38   :  { %194 = dma.done.wait [#allocation7], 256  }
  0x39   :  { %195 = vsyncadd [#allocation7], 4294967040 }
  0x3a   :  { %98 = vsyncpa [#allocation7], 1 }
  0x3b   :  { %99 = vsyncmov [#allocation3] }
  0x3e   :  { %s100_s5 = vpop.sfrf %99 }
  0x3f   :  { %p127_p1 = scmp.ne.s32.totalorder %s100_s5, 0 }
  0x41   :  { %104 = shalt.err (%p127_p1)  }

</bundles_post_ra>
